<compile_context>
chip_gen: v7x
topology: tpu7x:2x2x1
jax: 0.10.0
libtpu: 0.0.40
codegen_flags: <defaults>
</compile_context>

<pallas_src>
import functools

import jax
import jax.numpy as jnp
import numpy as np
from jax.experimental import pallas as pl
from jax.experimental.pallas import tpu as pltpu


def _cosigup_kernel(q_ref, w_ref, b_ref, ah_ref, awt_ref, o_ref, *, Hc, Cout):
    """One batch element per grid step.

    q_ref   : (1, Hc*KK, Wc)     im2col patches, rows ordered (h, tap)
    w_ref   : (Cout*Hc, Hc*KK)   block-diagonal conv weights
    b_ref   : (Cout*Hc, 1)       bias broadcast column
    ah_ref  : (OUT, Hc)          H-axis bilinear matrix
    awt_ref : (Wc, OUT)          W-axis bilinear matrix (transposed)
    o_ref   : (1, Cout, OUT, OUT)
    """
    # Conv as a single MXU matmul, result already channel-stacked:
    #   z[(c, h), w] = conv(x)[c, h, w]
    z = jnp.dot(w_ref[...], q_ref[0], preferred_element_type=jnp.float32)
    z = z + b_ref[...]                                     # (Cout*Hc, Wc)

    # Sigmoid: exp on the EUP + approximate reciprocal on the EUP.
    y = pl.reciprocal(1.0 + jnp.exp(-z), approx=True)      # (Cout*Hc, Wc)

    # W-axis upsample, batched over all channels -> lane-dense intermediate.
    u = jnp.dot(y, awt_ref[...], preferred_element_type=jnp.float32)  # (Cout*Hc, OUT)

    # H-axis upsample: one dense (OUT, Hc) x (Hc, OUT) matmul per channel.
    # Cout is tiny; static unroll keeps slices zero-cost and stores full tiles.
    ah = ah_ref[...]
    for c in range(Cout):
        o_ref[0, c] = jnp.dot(ah, u[c * Hc:(c + 1) * Hc, :],
                              preferred_element_type=jnp.float32)


def bilinear_matrix(out_size, in_size):
    """Interpolation matrix matching torch Upsample(mode='bilinear', align_corners=False)."""
    scale = in_size / out_size
    dst = jnp.arange(out_size, dtype=jnp.float32)
    src = jnp.maximum((dst + 0.5) * scale - 0.5, 0.0)
    i0 = jnp.minimum(jnp.floor(src).astype(jnp.int32), in_size - 1)
    i1 = jnp.minimum(i0 + 1, in_size - 1)
    frac = src - i0.astype(jnp.float32)
    rows = jnp.arange(out_size)
    A = jnp.zeros((out_size, in_size), jnp.float32)
    A = A.at[rows, i0].add(1.0 - frac)
    A = A.at[rows, i1].add(frac)
    return A


def cosigup(x, w, b, *, size, padding=1, dilation=1):
    """CoSigUp forward: Upsample(Sigmoid(Conv2d(x))).  x is NCHW, w is OIHW."""
    N, Cin, H, W = x.shape
    Cout, _, KH, KW = w.shape
    KK = Cin * KH * KW
    Hc = H + 2 * padding - dilation * (KH - 1)
    Wc = W + 2 * padding - dilation * (KW - 1)

    x = x.astype(jnp.float32)
    xp = jnp.pad(x, ((0, 0), (0, 0), (padding, padding), (padding, padding)))

    # im2col in the wrapper: taps stacked as (N, KK, Hc, Wc), then reordered so
    # patch-matrix rows are (h, tap) -> (N, Hc*KK, Wc).
    taps = []
    for ci in range(Cin):
        for kh in range(KH):
            for kw in range(KW):
                taps.append(xp[:, ci,
                               kh * dilation: kh * dilation + Hc,
                               kw * dilation: kw * dilation + Wc])
    patches = jnp.stack(taps, axis=1)                        # (N, KK, Hc, Wc)
    q = patches.transpose(0, 2, 1, 3).reshape(N, Hc * KK, Wc)

    # Block-diagonal conv weights: Wstack[(c,h), (g,k)] = (h == g) * w[c, k]
    w2 = w.astype(jnp.float32).reshape(Cout, KK)
    wstack = jnp.einsum("hg,ck->chgk",
                        jnp.eye(Hc, dtype=jnp.float32), w2).reshape(Cout * Hc, Hc * KK)
    b_all = jnp.repeat(b.astype(jnp.float32), Hc)[:, None]   # (Cout*Hc, 1)

    Ah = bilinear_matrix(size, Hc)          # (OUT, Hc)
    AwT = bilinear_matrix(size, Wc).T       # (Wc, OUT)

    kernel = functools.partial(_cosigup_kernel, Hc=Hc, Cout=Cout)

    # Advisory cost estimate so XLA can schedule around the custom call.
    flops = N * (2 * (Cout * Hc) * (Hc * KK) * Wc        # conv matmul
                 + 2 * (Cout * Hc) * Wc * size           # u = Y @ AwT
                 + 2 * Cout * size * Hc * size)          # Ah @ u_c per channel
    transcendentals = N * Cout * Hc * Wc                 # exp in sigmoid
    bytes_accessed = 4 * (q.size + wstack.size + b_all.size
                          + Ah.size + AwT.size + N * Cout * size * size)

    out = pl.pallas_call(
        kernel,
        out_shape=jax.ShapeDtypeStruct((N, Cout, size, size), jnp.float32),
        grid=(N,),
        in_specs=[
            pl.BlockSpec((1, Hc * KK, Wc), lambda n: (n, 0, 0)),
            pl.BlockSpec((Cout * Hc, Hc * KK), lambda n: (0, 0)),
            pl.BlockSpec((Cout * Hc, 1), lambda n: (0, 0)),
            pl.BlockSpec((size, Hc), lambda n: (0, 0)),
            pl.BlockSpec((Wc, size), lambda n: (0, 0)),
        ],
        out_specs=pl.BlockSpec((1, Cout, size, size), lambda n: (n, 0, 0, 0)),
        compiler_params=pltpu.CompilerParams(
            dimension_semantics=("parallel",)),              # megacore on v7x
        cost_estimate=pl.CostEstimate(flops=int(flops),
                                      transcendentals=int(transcendentals),
                                      bytes_accessed=int(bytes_accessed)),
    )(q, wstack, b_all, Ah, AwT)
    return out


def cosigup_reference(x, w, b, *, size, padding=1, dilation=1):
    """Pure-JAX reference (same semantics as the PyTorch module)."""
    y = jax.lax.conv_general_dilated(
        x.astype(jnp.float32), w.astype(jnp.float32),
        window_strides=(1, 1),
        padding=((padding, padding), (padding, padding)),
        rhs_dilation=(dilation, dilation),
        dimension_numbers=("NCHW", "OIHW", "NCHW"),
        precision=jax.lax.Precision.HIGHEST)
    y = jax.nn.sigmoid(y + b[None, :, None, None])
    Ah = bilinear_matrix(size, y.shape[2])
    Aw = bilinear_matrix(size, y.shape[3])
    return jnp.einsum("oh,nchw,pw->ncop", Ah, y, Aw,
                      precision=jax.lax.Precision.HIGHEST)


if __name__ == "__main__":
    # Small shapes consistent with CoSigUp(in_ch=4, out_ch=4) on a (2,4,16,16)
    # NCHW input.  SIZE=128 (multiple of 128) keeps output stores lane-dense;
    # the module default of 256 is also lane-dense.
    N, IN_CH, OUT_CH, H, W = 2, 4, 4, 16, 16
    K = 3
    SIZE = 128

    key = jax.random.PRNGKey(0)
    kx, kw, kb = jax.random.split(key, 3)
    x = jax.random.normal(kx, (N, IN_CH, H, W), dtype=jnp.float32)
    bound = 1.0 / np.sqrt(IN_CH * K * K)   # deterministic, Conv2d-default-like scale
    w = jax.random.uniform(kw, (OUT_CH, IN_CH, K, K), jnp.float32, -bound, bound)
    b = jax.random.uniform(kb, (OUT_CH,), jnp.float32, -bound, bound)

    cosigup_jit = jax.jit(functools.partial(cosigup, size=SIZE))
    out = jax.block_until_ready(cosigup_jit(x, w, b))
    ref = cosigup_reference(x, w, b, size=SIZE)

    assert out.shape == (N, OUT_CH, SIZE, SIZE)
    # 5e-3 tolerance: the in-kernel sigmoid uses the EUP approximate
    # reciprocal (pl.reciprocal(..., approx=True)); values lie in (0, 1).
    np.testing.assert_allclose(np.asarray(out), np.asarray(ref), rtol=5e-3, atol=5e-3)
    print("KERNEL_OK")
</pallas_src>

<mosaic_0001>
module attributes {stable_mosaic.version = 11 : i64} {
  func.func private @main(%arg0: i32) attributes {dimension_semantics = [#tpu.dimension_semantics<core_parallel>], iteration_bounds = array<i64: 2>, tpu.core_type = #tpu.core_type<sc_scalar_subcore>, window_params = []} {
    return
  }
}

module attributes {stable_mosaic.version = 11 : i64} {
  func.func private @main(%arg0: i32) attributes {dimension_semantics = [#tpu.dimension_semantics<core_parallel>], iteration_bounds = array<i64: 2>, tpu.core_type = #tpu.core_type<sc_scalar_subcore>, window_params = []} {
    return
  }
}

module attributes {stable_mosaic.version = 11 : i64} {
  func.func @_cosigup_kernel(%arg0: i32, %arg1: memref<1x576x16xf32, #tpu.memory_space<vmem>>, %arg2: memref<64x576xf32, #tpu.memory_space<vmem>>, %arg3: memref<64x1xf32, #tpu.memory_space<vmem>>, %arg4: memref<128x16xf32, #tpu.memory_space<vmem>>, %arg5: memref<16x128xf32, #tpu.memory_space<vmem>>, %arg6: memref<1x4x128x128xf32, #tpu.memory_space<vmem>>) attributes {dimension_semantics = [#tpu.dimension_semantics<parallel>], iteration_bounds = array<i64: 2>, scalar_prefetch = 0 : i64, scratch_operands = 0 : i64, tpu.core_type = #tpu.core_type<tc>, window_params = [{transform_indices = @transform_0, window_bounds = array<i64: 1, 576, 16>}, {pipeline_mode = #tpu.pipeline_mode<synchronous>, transform_indices = @transform_1, window_bounds = array<i64: 64, 576>}, {pipeline_mode = #tpu.pipeline_mode<synchronous>, transform_indices = @transform_2, window_bounds = array<i64: 64, 1>}, {pipeline_mode = #tpu.pipeline_mode<synchronous>, transform_indices = @transform_3, window_bounds = array<i64: 128, 16>}, {pipeline_mode = #tpu.pipeline_mode<synchronous>, transform_indices = @transform_4, window_bounds = array<i64: 16, 128>}, {transform_indices = @transform_5, window_bounds = array<i64: 1, 4, 128, 128>}]} {
    %c0 = arith.constant 0 : index
    %c0_0 = arith.constant 0 : index
    %0 = vector.load %arg2[%c0, %c0_0] : memref<64x576xf32, #tpu.memory_space<vmem>>, vector<64x576xf32>
    %c0_1 = arith.constant 0 : index
    %c0_2 = arith.constant 0 : index
    %c0_3 = arith.constant 0 : index
    %1 = vector.load %arg1[%c0_1, %c0_2, %c0_3] : memref<1x576x16xf32, #tpu.memory_space<vmem>>, vector<1x576x16xf32>
    %2 = vector.shape_cast %1 : vector<1x576x16xf32> to vector<576x16xf32>
    %cst = arith.constant dense<0.000000e+00> : vector<64x16xf32>
    %3 = tpu.matmul %0, %2, %cst {dimension_numbers = #tpu.dot_dimension_numbers<[1], [0], [0], [1], [0, 0, 1, 1], [], []>} : vector<64x576xf32>, vector<576x16xf32>, vector<64x16xf32> -> vector<64x16xf32>
    %c0_4 = arith.constant 0 : index
    %c0_5 = arith.constant 0 : index
    %4 = vector.load %arg3[%c0_4, %c0_5] : memref<64x1xf32, #tpu.memory_space<vmem>>, vector<64x1xf32>
    %5 = vector.broadcast %4 : vector<64x1xf32> to vector<64x16xf32>
    %6 = arith.addf %3, %5 : vector<64x16xf32>
    %cst_6 = arith.constant 0.000000e+00 : f32
    %7 = vector.broadcast %cst_6 : f32 to vector<64x16xf32>
    %8 = arith.subf %7, %6 : vector<64x16xf32>
    %9 = math.exp %8 : vector<64x16xf32>
    %cst_7 = arith.constant 1.000000e+00 : f32
    %10 = vector.broadcast %cst_7 : f32 to vector<64x16xf32>
    %11 = arith.addf %10, %9 : vector<64x16xf32>
    %12 = tpu.reciprocal %11 {approx = true} : vector<64x16xf32> -> vector<64x16xf32>
    %c0_8 = arith.constant 0 : index
    %c0_9 = arith.constant 0 : index
    %13 = vector.load %arg5[%c0_8, %c0_9] : memref<16x128xf32, #tpu.memory_space<vmem>>, vector<16x128xf32>
    %cst_10 = arith.constant dense<0.000000e+00> : vector<64x128xf32>
    %14 = tpu.matmul %12, %13, %cst_10 {dimension_numbers = #tpu.dot_dimension_numbers<[1], [0], [0], [1], [0, 0, 1, 1], [], []>} : vector<64x16xf32>, vector<16x128xf32>, vector<64x128xf32> -> vector<64x128xf32>
    %c0_11 = arith.constant 0 : index
    %c0_12 = arith.constant 0 : index
    %15 = vector.load %arg4[%c0_11, %c0_12] : memref<128x16xf32, #tpu.memory_space<vmem>>, vector<128x16xf32>
    %16 = vector.extract_strided_slice %14 {offsets = [0, 0], sizes = [16, 128], strides = [1, 1]} : vector<64x128xf32> to vector<16x128xf32>
    %cst_13 = arith.constant dense<0.000000e+00> : vector<128x128xf32>
    %17 = tpu.matmul %15, %16, %cst_13 {dimension_numbers = #tpu.dot_dimension_numbers<[1], [0], [0], [1], [0, 0, 1, 1], [], []>} : vector<128x16xf32>, vector<16x128xf32>, vector<128x128xf32> -> vector<128x128xf32>
    %c0_14 = arith.constant 0 : index
    %c0_15 = arith.constant 0 : index
    %c0_16 = arith.constant 0 : index
    %c0_17 = arith.constant 0 : index
    %18 = vector.load %arg6[%c0_14, %c0_15, %c0_16, %c0_17] : memref<1x4x128x128xf32, #tpu.memory_space<vmem>>, vector<1x1x128x128xf32>
    %19 = vector.shape_cast %18 : vector<1x1x128x128xf32> to vector<128x128xf32>
    %20 = vector.shape_cast %17 : vector<128x128xf32> to vector<1x1x128x128xf32>
    tpu.vector_store %arg6[%c0_14, %c0_15, %c0_16, %c0_17], %20 {strides = array<i32>} : memref<1x4x128x128xf32, #tpu.memory_space<vmem>>, vector<1x1x128x128xf32>,
    %21 = vector.extract_strided_slice %14 {offsets = [16, 0], sizes = [16, 128], strides = [1, 1]} : vector<64x128xf32> to vector<16x128xf32>
    %cst_18 = arith.constant dense<0.000000e+00> : vector<128x128xf32>
    %22 = tpu.matmul %15, %21, %cst_18 {dimension_numbers = #tpu.dot_dimension_numbers<[1], [0], [0], [1], [0, 0, 1, 1], [], []>} : vector<128x16xf32>, vector<16x128xf32>, vector<128x128xf32> -> vector<128x128xf32>
    %c0_19 = arith.constant 0 : index
    %c1 = arith.constant 1 : index
    %c0_20 = arith.constant 0 : index
    %c0_21 = arith.constant 0 : index
    %23 = vector.load %arg6[%c0_19, %c1, %c0_20, %c0_21] : memref<1x4x128x128xf32, #tpu.memory_space<vmem>>, vector<1x1x128x128xf32>
    %24 = vector.shape_cast %23 : vector<1x1x128x128xf32> to vector<128x128xf32>
    %25 = vector.shape_cast %22 : vector<128x128xf32> to vector<1x1x128x128xf32>
    tpu.vector_store %arg6[%c0_19, %c1, %c0_20, %c0_21], %25 {strides = array<i32>} : memref<1x4x128x128xf32, #tpu.memory_space<vmem>>, vector<1x1x128x128xf32>,
    %26 = vector.extract_strided_slice %14 {offsets = [32, 0], sizes = [16, 128], strides = [1, 1]} : vector<64x128xf32> to vector<16x128xf32>
    %cst_22 = arith.constant dense<0.000000e+00> : vector<128x128xf32>
    %27 = tpu.matmul %15, %26, %cst_22 {dimension_numbers = #tpu.dot_dimension_numbers<[1], [0], [0], [1], [0, 0, 1, 1], [], []>} : vector<128x16xf32>, vector<16x128xf32>, vector<128x128xf32> -> vector<128x128xf32>
    %c0_23 = arith.constant 0 : index
    %c2 = arith.constant 2 : index
    %c0_24 = arith.constant 0 : index
    %c0_25 = arith.constant 0 : index
    %28 = vector.load %arg6[%c0_23, %c2, %c0_24, %c0_25] : memref<1x4x128x128xf32, #tpu.memory_space<vmem>>, vector<1x1x128x128xf32>
    %29 = vector.shape_cast %28 : vector<1x1x128x128xf32> to vector<128x128xf32>
    %30 = vector.shape_cast %27 : vector<128x128xf32> to vector<1x1x128x128xf32>
    tpu.vector_store %arg6[%c0_23, %c2, %c0_24, %c0_25], %30 {strides = array<i32>} : memref<1x4x128x128xf32, #tpu.memory_space<vmem>>, vector<1x1x128x128xf32>,
    %31 = vector.extract_strided_slice %14 {offsets = [48, 0], sizes = [16, 128], strides = [1, 1]} : vector<64x128xf32> to vector<16x128xf32>
    %cst_26 = arith.constant dense<0.000000e+00> : vector<128x128xf32>
    %32 = tpu.matmul %15, %31, %cst_26 {dimension_numbers = #tpu.dot_dimension_numbers<[1], [0], [0], [1], [0, 0, 1, 1], [], []>} : vector<128x16xf32>, vector<16x128xf32>, vector<128x128xf32> -> vector<128x128xf32>
    %c0_27 = arith.constant 0 : index
    %c3 = arith.constant 3 : index
    %c0_28 = arith.constant 0 : index
    %c0_29 = arith.constant 0 : index
    %33 = vector.load %arg6[%c0_27, %c3, %c0_28, %c0_29] : memref<1x4x128x128xf32, #tpu.memory_space<vmem>>, vector<1x1x128x128xf32>
    %34 = vector.shape_cast %33 : vector<1x1x128x128xf32> to vector<128x128xf32>
    %35 = vector.shape_cast %32 : vector<128x128xf32> to vector<1x1x128x128xf32>
    tpu.vector_store %arg6[%c0_27, %c3, %c0_28, %c0_29], %35 {strides = array<i32>} : memref<1x4x128x128xf32, #tpu.memory_space<vmem>>, vector<1x1x128x128xf32>,
    return
  }
  func.func @transform_0(%arg0: i32) -> (i32, i32, i32) {
    %c0_i32 = arith.constant 0 : i32
    %c0_i32_0 = arith.constant 0 : i32
    %c0_i32_1 = arith.constant 0 : i32
    return %arg0, %c0_i32, %c0_i32_0 : i32, i32, i32
  }
  func.func @transform_1(%arg0: i32) -> (i32, i32) {
    %c0_i32 = arith.constant 0 : i32
    %c0_i32_0 = arith.constant 0 : i32
    %c0_i32_1 = arith.constant 0 : i32
    return %c0_i32, %c0_i32_0 : i32, i32
  }
  func.func @transform_2(%arg0: i32) -> (i32, i32) {
    %c0_i32 = arith.constant 0 : i32
    %c0_i32_0 = arith.constant 0 : i32
    %c0_i32_1 = arith.constant 0 : i32
    return %c0_i32, %c0_i32_0 : i32, i32
  }
  func.func @transform_3(%arg0: i32) -> (i32, i32) {
    %c0_i32 = arith.constant 0 : i32
    %c0_i32_0 = arith.constant 0 : i32
    %c0_i32_1 = arith.constant 0 : i32
    return %c0_i32, %c0_i32_0 : i32, i32
  }
  func.func @transform_4(%arg0: i32) -> (i32, i32) {
    %c0_i32 = arith.constant 0 : i32
    %c0_i32_0 = arith.constant 0 : i32
    %c0_i32_1 = arith.constant 0 : i32
    return %c0_i32, %c0_i32_0 : i32, i32
  }
  func.func @transform_5(%arg0: i32) -> (i32, i32, i32, i32) {
    %c0_i32 = arith.constant 0 : i32
    %c0_i32_0 = arith.constant 0 : i32
    %c0_i32_1 = arith.constant 0 : i32
    %c0_i32_2 = arith.constant 0 : i32
    return %arg0, %c0_i32, %c0_i32_0, %c0_i32_1 : i32, i32, i32, i32
  }
}

</mosaic_0001>

<bundles_post_ra>
// kernel: cosigup.1
= control target key start
LH: loop header
LB: loop body
LE: loop exit
PB: predicated region body
PF: predicated region fallthrough
CT: control target
= control target key end

     0   :  { %10 = vsyncpa [#allocation3], 0  ;;  %s2995_s0 = inlined_call_operand.vmem [shape: f32[2,576,16], index: 0, kind: input, shape index: {}]   ;;  %s2996_s1 = inlined_call_operand.vmem [shape: f32[64,576], index: 1, kind: input, shape index: {}]   ;;  %s2997_s2 = inlined_call_operand.vmem [shape: f32[64,1], index: 2, kind: input, shape index: {}]   ;;  %s2998_s3 = inlined_call_operand.vmem [shape: f32[128,16], index: 3, kind: input, shape index: {}]   ;;  %s2999_s4 = inlined_call_operand.vmem [shape: f32[16,128], index: 4, kind: input, shape index: {}]   ;;  %s3000_s5 = inlined_call_operand.hbm [shape: f32[2,4,128,128], index: 5, kind: output, shape index: {}]  }
   0x1   :  { %12 = vsyncpa [#allocation3 + $0x1], 0  ;;  %s2463_s18 = smov 0   ;;  %s2465_s19 = smov 0  }
   0x2   :  { %s2467_s20 = smov 0   ;;  %s2469_s21 = smov 0  }
   0x3 LB: > { %s2484_s22 = sadd.s32 4294967295, %s2427_s21   ;;  %s1682_s23 = sadd.s32 4294967294, %s2427_s21   ;;  %s2427_s21 = sphi %s2469_s21, %s3006_s21   ;;  %s2423_s20 = sphi %s2467_s20, %s3005_s20   ;;  %s2419_s19 = sphi %s2465_s19, %s3004_s19   ;;  %s2415_s18 = sphi %s2463_s18, %s3003_s18  }
   0x4   : > { %s2488_s24 = sadd.s32 1, %s2427_s21   ;;  %s135_s25 = sadd.s32 1, %s2423_s20 }
   0x5   : > { %s132_s26 = ssub.s32 %s2427_s21, %s2488_s24  ;;  %p145_p0 = scmp.ne.s32.totalorder %s2423_s20, %s2419_s19 }
   0x6   : > { %p133_p1 = scmp.eq.s32.totalorder %s132_s26, 0  ;;  %p146_p2 = scmp.eq.s32.totalorder %s2484_s22, 1 }
   0x7   : > { %p151_p3 = scmp.ne.s32.totalorder %s2419_s19, %s2415_s18  ;;  %p152_p4 = scmp.eq.s32.totalorder %s1682_s23, 1 }
   0x8   : > { %s2499_s27 = scalar_select %p133_p1, %s2423_s20, %s135_s25  }
   0x9   : > { %p2501_p5 = por %p146_p2, %p145_p0  ;;  %p2505_p6 = por %p152_p4, %p151_p3 }
   0xa   : > { %p1685_p7 = scmp.ge.s32.totalorder %s2427_s21, 1  ;;  %p190_p8 = scmp.lt.s32.totalorder %s2427_s21, 3 }
   0xc   : > { %p191_p9 = pnand %p1685_p7, %p190_p8 }
   0xd   : > { %p218_p10 = scmp.lt.s32.totalorder (!%p191_p9), %s2484_s22, 1  ;;  %v224_v0 = vld [vmem:[%s2996_s1 + $0x8] sm:$0xff] (!%p191_p9)  ;;  %v226_v1 = vld [vmem:[%s2996_s1 + $0x18] sm:$0xff] (!%p191_p9)  ;;  %v2429_v2 = vmov (!%p191_p9), 0   ;;  %vm383_vm0 = vcmask (!%p191_p9), 523264   ;;  %vm765_vm1 = vcmask (!%p191_p9), 130048  }
   0xe   : > { %194 = sbr.rel (%p191_p9) target bundleno = 848 (0x350), region = 40  ;;  %472 = vmatprep.mubr.f32.mxu0 (!%p191_p9), %v224_v0  ;;  %577 = vmatprep.mubr.f32.mxu1 (!%p191_p9), %v226_v1  ;;  %s215_s16 = sand.u32 (!%p191_p9), 1, %s2419_s19  }
   0xf   : > { %2331 = vset.pattern.permute.xlu0 (!%p191_p9), %v2429_v2  ;;  %2332 = vset.pattern.permute.xlu1 (!%p191_p9), %v2429_v2  ;;  %s1686_s17 = sshll.u32 (!%p191_p9), %s215_s16, 9  ;;  %s1821_s23 = sshll.u32 (!%p191_p9), %s2484_s22, 13 }
  0x10   : > { %s2945_s6 = scalar_lea.hbm (!%p191_p9), %s3000_s5, %s1821_s23  ;;  %s2430_s8 = smov (!%p191_p9), [#allocation2]  }
  0x15   : > { %s219_s9 = scalar_select %p218_p10, %s2484_s22, 1 }
  0x16   : > { %s2954_s22 = scalar_lea.sflag [#allocation3], %s215_s16 }
  0x17   : > { %s2288_s10 = smul.u32 576, %s219_s9  ;;  %s2369_s9 = sshll.u32 %s2430_s8, 4  ;;  %s2370_s9 = int_to_ptr.vmem [resolvable:$false] %s2369_s9 }
  0x19   : > { %s2522_s13 = scalar_lea.vmem %s2995_s0, %s2288_s10  ;;  %s2371_s10 = scalar_lea.vmem %s2370_s9, 16384 }
  0x1a   : > { %v279_v3 = vld [vmem:[%s2522_s13 + $0x80] sm:$0xff]  ;;  %v280_v4 = vld [vmem:[%s2522_s13 + $0x88] sm:$0xff]  ;;  %v281_v14 = vld [vmem:[%s2522_s13 + $0x90] sm:$0xff] }
  0x1b   : > { %v263_v5 = vld [vmem:[%s2522_s13] sm:$0xff]  ;;  %v2188_v6 = vpack.c.bf16 %v280_v4, %v279_v3  ;;  %v264_v7 = vld [vmem:[%s2522_s13 + $0x8] sm:$0xff]  ;;  %v282_v16 = vld [vmem:[%s2522_s13 + $0x98] sm:$0xff] }
  0x1c   : > { %v311_v8 = vld [vmem:[%s2522_s13 + $0x180] sm:$0xff]  ;;  %v312_v9 = vld [vmem:[%s2522_s13 + $0x188] sm:$0xff]  ;;  %v2190_v10 = vpack.c.bf16 %v264_v7, %v263_v5  ;;  %v265_v17 = vld [vmem:[%s2522_s13 + $0x10] sm:$0xff]  ;;  %v2192_v19 = vpack.c.bf16 %v282_v16, %v281_v14 }
  0x1d   : > { %v2220_v11 = vpack.c.bf16 %v312_v9, %v311_v8  ;;  %v295_v12 = vld [vmem:[%s2522_s13 + $0x100] sm:$0xff]  ;;  %v296_v13 = vld [vmem:[%s2522_s13 + $0x108] sm:$0xff]  ;;  %2189 = vmatprep.subr.bf16.mxu0 %v2188_v6  ;;  %v266_v18 = vld [vmem:[%s2522_s13 + $0x18] sm:$0xff] }
  0x1e   : > { %v2222_v15 = vpack.c.bf16 %v296_v13, %v295_v12  ;;  %2191 = vmatpush3.bf16.msra.mxu0 %v2190_v10  ;;  %v2194_v20 = vpack.c.bf16 %v266_v18, %v265_v17  ;;  %v313_v21 = vld [vmem:[%s2522_s13 + $0x190] sm:$0xff]  ;;  %v314_v22 = vld [vmem:[%s2522_s13 + $0x198] sm:$0xff]  ;;  %v283_v26 = vld [vmem:[%s2522_s13 + $0xa0] sm:$0xff] }
  0x1f   : > { %2221 = vmatprep.subr.bf16.mxu1 %v2220_v11  ;;  %v297_v23 = vld [vmem:[%s2522_s13 + $0x110] sm:$0xff]  ;;  %v2224_v24 = vpack.c.bf16 %v314_v22, %v313_v21  ;;  %v298_v25 = vld [vmem:[%s2522_s13 + $0x118] sm:$0xff]  ;;  %v284_v27 = vld [vmem:[%s2522_s13 + $0xa8] sm:$0xff]  ;;  %2193 = vmatprep.subr.bf16.mxu0 %v2192_v19 }
  0x20   : > { %2223 = vmatpush3.bf16.msra.mxu1 %v2222_v15  ;;  %v2226_v28 = vpack.c.bf16 %v298_v25, %v297_v23  ;;  %v2196_v29 = vpack.c.bf16 %v284_v27, %v283_v26  ;;  %v267_v30 = vld [vmem:[%s2522_s13 + $0x20] sm:$0xff]  ;;  %v268_v31 = vld [vmem:[%s2522_s13 + $0x28] sm:$0xff]  ;;  %v285_v38 = vld [vmem:[%s2522_s13 + $0xb0] sm:$0xff] }
  0x21   : > { %v315_v32 = vld [vmem:[%s2522_s13 + $0x1a0] sm:$0xff]  ;;  %2225 = vmatprep.subr.bf16.mxu1 %v2224_v24  ;;  %v316_v33 = vld [vmem:[%s2522_s13 + $0x1a8] sm:$0xff]  ;;  %v2198_v36 = vpack.c.bf16 %v268_v31, %v267_v30  ;;  %v286_v39 = vld [vmem:[%s2522_s13 + $0xb8] sm:$0xff] }
  0x22   : > { %v299_v34 = vld [vmem:[%s2522_s13 + $0x120] sm:$0xff]  ;;  %v300_v35 = vld [vmem:[%s2522_s13 + $0x128] sm:$0xff]  ;;  %2195 = vmatpush3.bf16.msra.mxu0 %v2194_v20  ;;  %v2228_v37 = vpack.c.bf16 %v316_v33, %v315_v32  ;;  %v269_v40 = vld [vmem:[%s2522_s13 + $0x30] sm:$0xff]  ;;  %v2200_v42 = vpack.c.bf16 %v286_v39, %v285_v38 }
  0x23   : > { %2197 = vmatprep.subr.bf16.mxu0 %v2196_v29  ;;  %v2230_v41 = vpack.c.bf16 %v300_v35, %v299_v34  ;;  %v270_v43 = vld [vmem:[%s2522_s13 + $0x38] sm:$0xff]  ;;  %v317_v44 = vld [vmem:[%s2522_s13 + $0x1b0] sm:$0xff]  ;;  %v287_v49 = vld [vmem:[%s2522_s13 + $0xc0] sm:$0xff] }
  0x24   : > { %2227 = vmatpush3.bf16.msra.mxu1 %v2226_v28  ;;  %v318_v45 = vld [vmem:[%s2522_s13 + $0x1b8] sm:$0xff]  ;;  %v301_v47 = vld [vmem:[%s2522_s13 + $0x130] sm:$0xff]  ;;  %v288_v50 = vld [vmem:[%s2522_s13 + $0xc8] sm:$0xff]  ;;  %v2202_v51 = vpack.c.bf16 %v270_v43, %v269_v40 }
  0x25   : > { %2229 = vmatprep.subr.bf16.mxu1 %v2228_v37  ;;  %v2232_v46 = vpack.c.bf16 %v318_v45, %v317_v44  ;;  %v302_v48 = vld [vmem:[%s2522_s13 + $0x138] sm:$0xff]  ;;  %v319_v52 = vld [vmem:[%s2522_s13 + $0x1c0] sm:$0xff]  ;;  %v320_v53 = vld [vmem:[%s2522_s13 + $0x1c8] sm:$0xff]  ;;  %v2204_v55 = vpack.c.bf16 %v288_v50, %v287_v49 }
  0x26   : > { %2199 = vmatpush3.bf16.msra.mxu0 %v2198_v36  ;;  %v2234_v54 = vpack.c.bf16 %v302_v48, %v301_v47  ;;  %v271_v56 = vld [vmem:[%s2522_s13 + $0x40] sm:$0xff]  ;;  %v272_v57 = vld [vmem:[%s2522_s13 + $0x48] sm:$0xff]  ;;  %v2236_v59 = vpack.c.bf16 %v320_v53, %v319_v52  ;;  %v289_v61 = vld [vmem:[%s2522_s13 + $0xd0] sm:$0xff] }
  0x27   : > { %2201 = vmatprep.subr.bf16.mxu0 %v2200_v42  ;;  %v303_v58 = vld [vmem:[%s2522_s13 + $0x140] sm:$0xff]  ;;  %v304_v60 = vld [vmem:[%s2522_s13 + $0x148] sm:$0xff]  ;;  %v290_v62 = vld [vmem:[%s2522_s13 + $0xd8] sm:$0xff]  ;;  %v2206_v1 = vpack.c.bf16 %v272_v57, %v271_v56 }
  0x28   : > { %2231 = vmatpush3.bf16.msra.mxu1 %v2230_v41  ;;  %v321_v63 = vld [vmem:[%s2522_s13 + $0x1d0] sm:$0xff]  ;;  %v322_v0 = vld [vmem:[%s2522_s13 + $0x1d8] sm:$0xff]  ;;  %v2238_v2 = vpack.c.bf16 %v304_v60, %v303_v58  ;;  %v2208_v3 = vpack.c.bf16 %v290_v62, %v289_v61  ;;  %v291_v9 = vld [vmem:[%s2522_s13 + $0xe0] sm:$0xff] }
  0x29   : > { %2233 = vmatprep.subr.bf16.mxu1 %v2232_v46  ;;  %v273_v4 = vld [vmem:[%s2522_s13 + $0x50] sm:$0xff]  ;;  %v274_v5 = vld [vmem:[%s2522_s13 + $0x58] sm:$0xff]  ;;  %v2240_v7 = vpack.c.bf16 %v322_v0, %v321_v63  ;;  %v292_v10 = vld [vmem:[%s2522_s13 + $0xe8] sm:$0xff] }
  0x2a   : > { %2203 = vmatpush3.bf16.msra.mxu0 %v2202_v51  ;;  %v305_v6 = vld [vmem:[%s2522_s13 + $0x150] sm:$0xff]  ;;  %v306_v8 = vld [vmem:[%s2522_s13 + $0x158] sm:$0xff]  ;;  %v323_v11 = vld [vmem:[%s2522_s13 + $0x1e0] sm:$0xff]  ;;  %v2210_v13 = vpack.c.bf16 %v274_v5, %v273_v4  ;;  %v2212_v15 = vpack.c.bf16 %v292_v10, %v291_v9 }
  0x2b   : > { %2205 = vmatprep.subr.bf16.mxu0 %v2204_v55  ;;  %v324_v12 = vld [vmem:[%s2522_s13 + $0x1e8] sm:$0xff]  ;;  %v2242_v14 = vpack.c.bf16 %v306_v8, %v305_v6  ;;  %v275_v16 = vld [vmem:[%s2522_s13 + $0x60] sm:$0xff]  ;;  %v293_v21 = vld [vmem:[%s2522_s13 + $0xf0] sm:$0xff] }
  0x2c   : > { %2235 = vmatpush3.bf16.msra.mxu1 %v2234_v54  ;;  %v276_v17 = vld [vmem:[%s2522_s13 + $0x68] sm:$0xff]  ;;  %v307_v18 = vld [vmem:[%s2522_s13 + $0x160] sm:$0xff]  ;;  %v2244_v19 = vpack.c.bf16 %v324_v12, %v323_v11  ;;  %v294_v22 = vld [vmem:[%s2522_s13 + $0xf8] sm:$0xff] }
  0x2d   : > { %2237 = vmatprep.subr.bf16.mxu1 %v2236_v59  ;;  %v308_v20 = vld [vmem:[%s2522_s13 + $0x168] sm:$0xff]  ;;  %v325_v23 = vld [vmem:[%s2522_s13 + $0x1f0] sm:$0xff]  ;;  %v326_v24 = vld [vmem:[%s2522_s13 + $0x1f8] sm:$0xff]  ;;  %v2214_v25 = vpack.c.bf16 %v276_v17, %v275_v16  ;;  %v2216_v27 = vpack.c.bf16 %v294_v22, %v293_v21 }
  0x2e   : > { %2207 = vmatpush3.bf16.msra.mxu0 %v2206_v1  ;;  %v2246_v26 = vpack.c.bf16 %v308_v20, %v307_v18  ;;  %v277_v28 = vld [vmem:[%s2522_s13 + $0x70] sm:$0xff]  ;;  %v278_v29 = vld [vmem:[%s2522_s13 + $0x78] sm:$0xff]  ;;  %v2248_v31 = vpack.c.bf16 %v326_v24, %v325_v23  ;;  %v327_v33 = vld [vmem:[%s2522_s13 + $0x200] sm:$0xff] }
  0x2f   : > { %2209 = vmatprep.subr.bf16.mxu0 %v2208_v3  ;;  %v309_v30 = vld [vmem:[%s2522_s13 + $0x170] sm:$0xff]  ;;  %v310_v32 = vld [vmem:[%s2522_s13 + $0x178] sm:$0xff]  ;;  %v328_v34 = vld [vmem:[%s2522_s13 + $0x208] sm:$0xff]  ;;  %v2218_v35 = vpack.c.bf16 %v278_v29, %v277_v28 }
  0x30   : > { %2239 = vmatpush3.bf16.msra.mxu1 %v2238_v2  ;;  %v2250_v36 = vpack.c.bf16 %v310_v32, %v309_v30  ;;  %v2252_v37 = vpack.c.bf16 %v328_v34, %v327_v33  ;;  %v335_v38 = vld [vmem:[%s2997_s2] sm:$0xff]  ;;  %v329_v39 = vld [vmem:[%s2522_s13 + $0x210] sm:$0xff]  ;;  %v330_v40 = vld [vmem:[%s2522_s13 + $0x218] sm:$0xff] }
  0x31   : > { %2241 = vmatprep.subr.bf16.mxu1 %v2240_v7  ;;  %345 = vperm.xlu0 %2331, %v335_v38   ;;  %v337_v41 = vld [vmem:[%s2997_s2 + $0x10] sm:$0xff]  ;;  %v223_v42 = vld [vmem:[%s2996_s1] sm:$0xff]  ;;  %v336_v43 = vld [vmem:[%s2997_s2 + $0x8] sm:$0xff]  ;;  %v2256_v47 = vpack.c.bf16 %v330_v40, %v329_v39 }
  0x32   : > { %2211 = vmatpush3.bf16.msra.mxu0 %v2210_v13  ;;  %355 = vperm.xlu1 %2332, %v337_v41   ;;  %v225_v44 = vld [vmem:[%s2996_s1 + $0x10] sm:$0xff]  ;;  %v231_v46 = vld [vmem:[%s2996_s1 + $0x40] sm:$0xff]  ;;  %v332_v49 = vld [vmem:[%s2522_s13 + $0x228] sm:$0xff] }
  0x33   : > { %2213 = vmatprep.subr.bf16.mxu0 %v2212_v15  ;;  %v229_v45 = vld [vmem:[%s2996_s1 + $0x30] sm:$0xff]  ;;  %v331_v48 = vld [vmem:[%s2522_s13 + $0x220] sm:$0xff]  ;;  %v338_v50 = vld [vmem:[%s2997_s2 + $0x18] sm:$0xff] }
  0x34   : > { %2243 = vmatpush3.bf16.msra.mxu1 %v2242_v14  ;;  %v228_v51 = vld [vmem:[%s2996_s1 + $0x28] sm:$0xff]  ;;  %v339_v52 = vld [vmem:[%s2997_s2 + $0x20] sm:$0xff]  ;;  %v230_v53 = vld [vmem:[%s2996_s1 + $0x38] sm:$0xff]  ;;  %v2260_v56 = vpack.c.bf16 %v332_v49, %v331_v48 }
  0x35   : > { %2245 = vmatprep.subr.bf16.mxu1 %v2244_v19  ;;  %350 = vperm.xlu0 %2331, %v336_v43   ;;  %v234_v54 = vld [vmem:[%s2996_s1 + $0x58] sm:$0xff]  ;;  %v236_v55 = vld [vmem:[%s2996_s1 + $0x68] sm:$0xff]  ;;  %v333_v57 = vld [vmem:[%s2522_s13 + $0x230] sm:$0xff] }
  0x36   : > { %2215 = vmatpush3.bf16.msra.mxu0 %v2214_v25  ;;  %360 = vperm.xlu1 %2332, %v338_v50   ;;  %v334_v58 = vld [vmem:[%s2522_s13 + $0x238] sm:$0xff]  ;;  %v340_v59 = vld [vmem:[%s2997_s2 + $0x28] sm:$0xff]  ;;  %v233_v60 = vld [vmem:[%s2996_s1 + $0x50] sm:$0xff]  ;;  %s2877_s13 = scalar_lea.vmem [#allocation2], %s1686_s17 }
  0x37   : > { %2217 = vmatprep.subr.bf16.mxu0 %v2216_v27  ;;  %v341_v61 = vld [vmem:[%s2997_s2 + $0x30] sm:$0xff]  ;;  %v235_v62 = vld [vmem:[%s2996_s1 + $0x60] sm:$0xff]  ;;  %v2264_v1 = vpack.c.bf16 %v334_v58, %v333_v57  ;;  %v342_v2 = vld [vmem:[%s2997_s2 + $0x38] sm:$0xff]  ;;  %s1620_s25 = sshll.u32 %s2877_s13, 4  ;;  %s2947_s25 = int_to_ptr.vmem [resolvable:$true] %s1620_s25 }
  0x38   : > { %2247 = vmatpush3.bf16.msra.mxu1 %v2246_v26  ;;  %v239_v63 = vld [vmem:[%s2996_s1 + $0x80] sm:$0xff]  ;;  %v241_v0 = vld [vmem:[%s2996_s1 + $0x90] sm:$0xff]  ;;  %v238_v3 = vld [vmem:[%s2996_s1 + $0x78] sm:$0xff]  ;;  %s2365_s7 = scalar_lea.vmem %s2947_s25, 8192  ;;  %p2372_p0 = scmp.lt.s32.totalorder %s2947_s25, %s2370_s9 }
  0x39   : > { %2249 = vmatprep.subr.bf16.mxu1 %v2248_v31  ;;  %365 = vperm.xlu0 %2331, %v339_v52   ;;  %v240_v4 = vld [vmem:[%s2996_s1 + $0x88] sm:$0xff]  ;;  %v246_v6 = vld [vmem:[%s2996_s1 + $0xb8] sm:$0xff]  ;;  %v243_v7 = vld [vmem:[%s2996_s1 + $0xa0] sm:$0xff]  ;;  %p2366_p11 = scmp.ne.s32.totalorder %s2947_s25, %s2365_s7  ;;  %p2373_p1 = scmp.lt.s32.totalorder %s2371_s10, %s2365_s7 }
  0x3a   : > { %2219 = vmatpush3.bf16.msra.mxu0 %v2218_v35  ;;  %370 = vperm.xlu1 %2332, %v340_v59   ;;  %v244_v5 = vld [vmem:[%s2996_s1 + $0xa8] sm:$0xff]  ;;  %v245_v8 = vld [vmem:[%s2996_s1 + $0xb0] sm:$0xff]  ;;  %v251_v10 = vld [vmem:[%s2996_s1 + $0xe0] sm:$0xff] }
  0x3b   : > { %2253 = vmatprep.subr.bf16.mxu0 %v2252_v37  ;;  %v249_v9 = vld [vmem:[%s2996_s1 + $0xd0] sm:$0xff]  ;;  %v248_v11 = vld [vmem:[%s2996_s1 + $0xc8] sm:$0xff]  ;;  %v250_v12 = vld [vmem:[%s2996_s1 + $0xd8] sm:$0xff]  ;;  %p2367_p12 = pnand %p2366_p11, %p2501_p5  ;;  %p2374_p2 = por %p2373_p1, %p2372_p0 }
  0x3c   : > { %2251 = vmatpush3.bf16.msra.mxu1 %v2250_v36  ;;  %v254_v13 = vld [vmem:[%s2996_s1 + $0xf8] sm:$0xff]  ;;  %v256_v14 = vld [vmem:[%s2996_s1 + $0x108] sm:$0xff]  ;;  %v253_v15 = vld [vmem:[%s2996_s1 + $0xf0] sm:$0xff] }
  0x3d   : > { %473 = vmatmul.mubr.f32.vlgmr.msra.gmra.mrb[0].mxu0 %v223_v42  ;;  %375 = vperm.xlu0 %2331, %v341_v61   ;;  %v255_v16 = vld [vmem:[%s2996_s1 + $0x100] sm:$0xff]  ;;  %v261_v18 = vld [vmem:[%s2996_s1 + $0x130] sm:$0xff]  ;;  %v258_v19 = vld [vmem:[%s2996_s1 + $0x118] sm:$0xff]  ;;  %p2368_p13 = pneg %p2367_p12 }
  0x3e   : > { %477 = vmatprep.mubr.f32.mxu0 %v229_v45  ;;  %2255 = vmatpush3.bf16.msra.mxu0 %v2252_v37  ;;  %v259_v17 = vld [vmem:[%s2996_s1 + $0x120] sm:$0xff]  ;;  %v260_v20 = vld [vmem:[%s2996_s1 + $0x128] sm:$0xff]  ;;  %v237_v23 = vld [vmem:[%s2996_s1 + $0x70] sm:$0xff] }
  0x3f   : > { %578 = vmatmul.mubr.f32.vlgmr.msra.gmra.mrb[0].mxu1 %v225_v44  ;;  %2257 = vmatprep.subr.bf16.mxu0 %v2256_v47  ;;  %v227_v21 = vld [vmem:[%s2996_s1 + $0x20] sm:$0xff]  ;;  %v232_v22 = vld [vmem:[%s2996_s1 + $0x48] sm:$0xff]  ;;  %v242_v24 = vld [vmem:[%s2996_s1 + $0x98] sm:$0xff]  ;;  %p2375_p3 = pnand %p2374_p2, %p2368_p13 }
  0x40   : > { %582 = vmatprep.mubr.f32.mxu1 %v231_v46  ;;  %380 = vperm.xlu1 %2332, %v342_v2   ;;  %v247_v25 = vld [vmem:[%s2996_s1 + $0xc0] sm:$0xff]  ;;  %v252_v26 = vld [vmem:[%s2996_s1 + $0xe8] sm:$0xff]  ;;  %v257_v27 = vld [vmem:[%s2996_s1 + $0x110] sm:$0xff] }
  0x41   : > { %478 = vmatmul.mubr.f32.gmra.mrb[2].mxu0 %v228_v51  ;;  %v262_v28 = vld [vmem:[%s2996_s1 + $0x138] sm:$0xff]  ;;  %v763_v29 = vld [vmem:[%s2999_s4] sm:$0xff]  ;;  %v764_v30 = vld [vmem:[%s2999_s4 + $0x8] sm:$0xff] }
  0x42   : > { %482 = vmatprep.mubr.f32.mxu0 %v234_v54  ;;  %2259 = vmatpush3.bf16.msra.mxu0 %v2256_v47  ;;  %v2268_v31 = vpack.c.bf16 %v764_v30, %v763_v29 }
  0x43   : > { %583 = vmatmul.mubr.f32.gmra.mrb[2].mxu1 %v230_v53  ;;  %2261 = vmatprep.subr.bf16.mxu0 %v2260_v56 }
  0x44   : > { %587 = vmatprep.mubr.f32.mxu1 %v236_v55  ;;  %2269 = vmatprep.subr.bf16.mxu1 %v2268_v31 }
  0x45   : > { %483 = vmatmul.mubr.f32.gmra.mrb[4].mxu0 %v233_v60  ;;  %2271 = vmatpush3.bf16.msra.mxu1 %v2268_v31 }
  0x46   : > { %487 = vmatprep.mubr.f32.mxu0 %v239_v63  ;;  %2263 = vmatpush3.bf16.msra.mxu0 %v2260_v56 }
  0x47   : > { %588 = vmatmul.mubr.f32.gmra.mrb[4].mxu1 %v235_v62  ;;  %2265 = vmatprep.subr.bf16.mxu0 %v2264_v1 }
  0x48   : > { %592 = vmatprep.mubr.f32.mxu1 %v241_v0 }
  0x49   : > { %488 = vmatmul.mubr.f32.gmra.mrb[6].mxu0 %v238_v3 }
  0x4a   : > { %492 = vmatprep.mubr.f32.mxu0 %v244_v5  ;;  %2267 = vmatpush3.bf16.msra.mxu0 %v2264_v1 }
  0x4b   : > { %593 = vmatmul.mubr.f32.gmra.mrb[6].mxu1 %v240_v4 }
  0x4c   : > { %597 = vmatprep.mubr.f32.mxu1 %v246_v6 }
  0x4d   : > { %493 = vmatmul.mubr.f32.gmra.mrb[8].mxu0 %v243_v7 }
  0x4e   : > { %497 = vmatprep.mubr.f32.mxu0 %v249_v9 }
  0x4f   : > { %598 = vmatmul.mubr.f32.gmra.mrb[8].mxu1 %v245_v8 }
  0x50   : > { %602 = vmatprep.mubr.f32.mxu1 %v251_v10 }
  0x51   : > { %498 = vmatmul.mubr.f32.gmra.mrb[10].mxu0 %v248_v11 }
  0x52   : > { %502 = vmatprep.mubr.f32.mxu0 %v254_v13 }
  0x53   : > { %603 = vmatmul.mubr.f32.gmra.mrb[10].mxu1 %v250_v12 }
  0x54   : > { %607 = vmatprep.mubr.f32.mxu1 %v256_v14 }
  0x55   : > { %503 = vmatmul.mubr.f32.gmra.mrb[12].mxu0 %v253_v15 }
  0x56   : > { %507 = vmatprep.mubr.f32.mxu0 %v259_v17 }
  0x57   : > { %608 = vmatmul.mubr.f32.gmra.mrb[12].mxu1 %v255_v16 }
  0x58   : > { %612 = vmatprep.mubr.f32.mxu1 %v261_v18 }
  0x59   : > { %508 = vmatmul.mubr.f32.gmra.mrb[14].mxu0 %v258_v19 }
  0x5a   : > { %2048 = vmatprep.mubr.msk.f32.mxu0 %vm383_vm0, %v227_v21 }
  0x5b   : > { %613 = vmatmul.mubr.f32.gmra.mrb[14].mxu1 %v260_v20 }
  0x5d   : > { %2049 = vmatmul.mubr.msk.f32.vlgmr.msra.gmra.mrb[16].mxu0 %vm383_vm0, %v232_v22 }
  0x5e   : > { %2051 = vmatprep.mubr.msk.f32.mxu0 %vm383_vm0, %v237_v23 }
  0x61   : > { %2052 = vmatmul.mubr.msk.f32.gmra.mrb[18].mxu0 %vm383_vm0, %v242_v24 }
  0x62   : > { %2054 = vmatprep.mubr.msk.f32.mxu0 %vm383_vm0, %v247_v25 }
  0x65   : > { %2055 = vmatmul.mubr.msk.f32.gmra.mrb[20].mxu0 %vm383_vm0, %v252_v26 }
  0x66   : > { %2057 = vmatprep.mubr.msk.f32.mxu0 %vm383_vm0, %v257_v27 }
  0x69   : > { %2058 = vmatmul.mubr.msk.f32.gmra.mrb[22].mxu0 %vm383_vm0, %v262_v28 }
  0xb0   : > { %v346_v32 = vpop.permute.xlu0 %345 }
  0xb1   : > { %v356_v46 = vpop.permute.xlu1 %355 }
  0xb4   : > { %v351_v41 = vpop.permute.xlu0 %350 }
  0xb5   : > { %v361_v59 = vpop.permute.xlu1 %360 }
  0xb8   : > { %v366_v4 = vpop.permute.xlu0 %365 }
  0xb9   : > { %v371_v13 = vpop.permute.xlu1 %370 }
  0xbc   : > { %v376_v22 = vpop.permute.xlu0 %375 }
  0xbf   : > { %v381_v31 = vpop.permute.xlu1 %380 }
 0x110   : > { %v1854_v33 = vpop.f32.mrb[0].mxu0 }
 0x111   : > { %v1855_v34 = vpop.f32.mrb[1].mxu0 }
 0x112   : > { %v1910_v35 = vpop.f32.mrb[0].mxu1  ;;  %v1856_v36 = vadd.f32 %v1855_v34, %v1854_v33 }
 0x113   : > { %v1911_v37 = vpop.f32.mrb[1].mxu1 }
 0x114   : > { %v1912_v38 = vadd.f32 %v1911_v37, %v1910_v35  ;;  %v475_v39 = vadd.f32 %v1856_v36, %v346_v32  ;;  %v1857_v40 = vpop.f32.mrb[2].mxu0 }
 0x115   : > { %v1858_v42 = vpop.f32.mrb[3].mxu0 }
 0x116   : > { %v1913_v43 = vpop.f32.mrb[2].mxu1  ;;  %v1859_v44 = vadd.f32 %v1858_v42, %v1857_v40  ;;  %v580_v47 = vadd.f32 %v1912_v38, %v475_v39 }
 0x117   : > { %v1914_v45 = vpop.f32.mrb[3].mxu1 }
 0x118   : > { %v1915_v48 = vadd.f32 %v1914_v45, %v1913_v43  ;;  %v480_v49 = vadd.f32 %v1859_v44, %v351_v41  ;;  %v1860_v50 = vpop.f32.mrb[4].mxu0 }
 0x119   : > { %v1861_v51 = vpop.f32.mrb[5].mxu0 }
 0x11a   : > { %v1916_v52 = vpop.f32.mrb[4].mxu1  ;;  %v1862_v53 = vadd.f32 %v1861_v51, %v1860_v50  ;;  %v585_v55 = vadd.f32 %v1915_v48, %v480_v49 }
 0x11b   : > { %v1917_v54 = vpop.f32.mrb[5].mxu1 }
 0x11c   : > { %v1918_v56 = vadd.f32 %v1917_v54, %v1916_v52  ;;  %v485_v57 = vadd.f32 %v1862_v53, %v356_v46  ;;  %v1863_v58 = vpop.f32.mrb[6].mxu0 }
 0x11d   : > { %v1864_v60 = vpop.f32.mrb[7].mxu0 }
 0x11e   : > { %v1919_v61 = vpop.f32.mrb[6].mxu1  ;;  %v1865_v62 = vadd.f32 %v1864_v60, %v1863_v58  ;;  %v590_v0 = vadd.f32 %v1918_v56, %v485_v57 }
 0x11f   : > { %v1920_v63 = vpop.f32.mrb[7].mxu1 }
 0x120   : > { %v1921_v1 = vadd.f32 %v1920_v63, %v1919_v61  ;;  %v490_v2 = vadd.f32 %v1865_v62, %v361_v59  ;;  %v1866_v3 = vpop.f32.mrb[8].mxu0 }
 0x121   : > { %v1867_v5 = vpop.f32.mrb[9].mxu0 }
 0x122   : > { %v1922_v6 = vpop.f32.mrb[8].mxu1  ;;  %v1868_v7 = vadd.f32 %v1867_v5, %v1866_v3  ;;  %v595_v9 = vadd.f32 %v1921_v1, %v490_v2 }
 0x123   : > { %v1923_v8 = vpop.f32.mrb[9].mxu1 }
 0x124   : > { %v1924_v10 = vadd.f32 %v1923_v8, %v1922_v6  ;;  %v495_v11 = vadd.f32 %v1868_v7, %v366_v4  ;;  %v1869_v12 = vpop.f32.mrb[10].mxu0 }
 0x125   : > { %v1870_v14 = vpop.f32.mrb[11].mxu0 }
 0x126   : > { %v1925_v15 = vpop.f32.mrb[10].mxu1  ;;  %v1871_v16 = vadd.f32 %v1870_v14, %v1869_v12  ;;  %v600_v18 = vadd.f32 %v1924_v10, %v495_v11 }
 0x127   : > { %v1926_v17 = vpop.f32.mrb[11].mxu1 }
 0x128   : > { %v1927_v19 = vadd.f32 %v1926_v17, %v1925_v15  ;;  %v500_v20 = vadd.f32 %v1871_v16, %v371_v13  ;;  %v1872_v21 = vpop.f32.mrb[12].mxu0 }
 0x129   : > { %v1873_v23 = vpop.f32.mrb[13].mxu0 }
 0x12a   : > { %v1928_v24 = vpop.f32.mrb[12].mxu1  ;;  %v1874_v25 = vadd.f32 %v1873_v23, %v1872_v21  ;;  %v605_v27 = vadd.f32 %v1927_v19, %v500_v20 }
 0x12b   : > { %v1929_v26 = vpop.f32.mrb[13].mxu1 }
 0x12c   : > { %v1930_v28 = vadd.f32 %v1929_v26, %v1928_v24  ;;  %v505_v29 = vadd.f32 %v1874_v25, %v376_v22  ;;  %v1875_v30 = vpop.f32.mrb[14].mxu0 }
 0x12d   : > { %v1876_v32 = vpop.f32.mrb[15].mxu0 }
 0x12e   : > { %v1931_v33 = vpop.f32.mrb[14].mxu1  ;;  %v1877_v34 = vadd.f32 %v1876_v32, %v1875_v30  ;;  %v610_v36 = vadd.f32 %v1930_v28, %v505_v29  ;;  %v2759_v32 = vld [vmem:[%s2998_s3] sm:$0xff] }
 0x12f   : > { %v1932_v35 = vpop.f32.mrb[15].mxu1  ;;  %2080 = vmatprep.mubr.msk.f32.mxu0 %vm765_vm1, %v2759_v32 }
 0x130   : > { %v1933_v37 = vadd.f32 %v1932_v35, %v1931_v33  ;;  %v510_v38 = vadd.f32 %v1877_v34, %v381_v31  ;;  %v2050_v39 = vpop.f32.mrb[16].mxu0 }
 0x131   : > { %v690_v40 = vadd.f32 %v2050_v39, %v585_v55  ;;  %v684_v41 = vpop.f32.mrb[17].mxu0 }
 0x132   : > { %v685_v42 = vadd.f32 %v684_v41, %v580_v47  ;;  %v615_v43 = vadd.f32 %v1933_v37, %v510_v38  ;;  %v896_v38 = vld [vmem:[%s2998_s3 + $0x8] sm:$0xff] }
 0x133   : > { %v724_v44 = vsub.f32 0.0, %v690_v40  ;;  %v897_v40 = vld [vmem:[%s2998_s3 + $0x10] sm:$0xff] }
 0x134   : > { %v723_v45 = vsub.f32 0.0, %v685_v42  ;;  %v2053_v46 = vpop.f32.mrb[18].mxu0 }
 0x135   : > { %v733_v48 = vmul.f32 1.442695, %v724_v44  ;;  %v700_v49 = vadd.f32 %v2053_v46, %v595_v9  ;;  %v694_v50 = vpop.f32.mrb[19].mxu0  ;;  %v898_v44 = vld [vmem:[%s2998_s3 + $0x18] sm:$0xff] }
 0x136   : > { %v731_v51 = vmul.f32 1.442695, %v723_v45  ;;  %v695_v52 = vadd.f32 %v694_v50, %v590_v0  ;;  %v899_v45 = vld [vmem:[%s2998_s3 + $0x20] sm:$0xff] }
 0x137   : > { %2333 = vpow2.f32 %v733_v48  ;;  %v726_v53 = vsub.f32 0.0, %v700_v49  ;;  %v900_v49 = vld [vmem:[%s2998_s3 + $0x28] sm:$0xff] }
 0x138   : > { %2335 = vpow2.f32 %v731_v51  ;;  %v725_v54 = vsub.f32 0.0, %v695_v52  ;;  %v2056_v56 = vpop.f32.mrb[20].mxu0  ;;  %v901_v51 = vld [vmem:[%s2998_s3 + $0x30] sm:$0xff]  ;;  %v902_v52 = vld [vmem:[%s2998_s3 + $0x38] sm:$0xff] }
 0x139   : > { %v737_v57 = vmul.f32 1.442695, %v726_v53  ;;  %v710_v58 = vadd.f32 %v2056_v56, %v605_v27  ;;  %v704_v59 = vpop.f32.mrb[21].mxu0  ;;  %v903_v53 = vld [vmem:[%s2998_s3 + $0x40] sm:$0xff]  ;;  %v905_v56 = vld [vmem:[%s2998_s3 + $0x50] sm:$0xff] }
 0x13a   : > { %v735_v55 = vmul.f32 1.442695, %v725_v54  ;;  %v705_v60 = vadd.f32 %v704_v59, %v600_v18  ;;  %v904_v54 = vld [vmem:[%s2998_s3 + $0x48] sm:$0xff] }
 0x13b   : > { %2337 = vpow2.f32 %v737_v57  ;;  %v728_v47 = vsub.f32 0.0, %v710_v58  ;;  %v906_v57 = vld [vmem:[%s2998_s3 + $0x58] sm:$0xff]  ;;  %v907_v58 = vld [vmem:[%s2998_s3 + $0x60] sm:$0xff]  ;;  %v908_v59 = vld [vmem:[%s2998_s3 + $0x68] sm:$0xff] }
 0x13c   : > { %2339 = vpow2.f32 %v735_v55  ;;  %v727_v61 = vsub.f32 0.0, %v705_v60  ;;  %v2059_v62 = vpop.f32.mrb[22].mxu0  ;;  %v909_v55 = vld [vmem:[%s2998_s3 + $0x70] sm:$0xff]  ;;  %v910_v60 = vld [vmem:[%s2998_s3 + $0x78] sm:$0xff] }
 0x13d   : > { %v741_v63 = vmul.f32 1.442695, %v728_v47  ;;  %v720_v1 = vadd.f32 %v2059_v62, %v615_v43  ;;  %v714_v2 = vpop.f32.mrb[23].mxu0 }
 0x13e   : > { %v739_v3 = vmul.f32 1.442695, %v727_v61  ;;  %v715_v0 = vadd.f32 %v714_v2, %v610_v36 }
 0x13f   : > { %2341 = vpow2.f32 %v741_v63  ;;  %v730_v4 = vsub.f32 0.0, %v720_v1 }
 0x140   : > { %2343 = vpow2.f32 %v739_v3  ;;  %v729_v5 = vsub.f32 0.0, %v715_v0 }
 0x141   : > { %v2334_v6 = vpop.eup %2333  ;;  %v745_v7 = vmul.f32 1.442695, %v730_v4 }
 0x142   : > { %v2336_v8 = vpop.eup %2335  ;;  %v748_v9 = vadd.f32 1.0, %v2334_v6  ;;  %v743_v10 = vmul.f32 1.442695, %v729_v5 }
 0x143   : > { %v747_v11 = vadd.f32 1.0, %v2336_v8  ;;  %2345 = vpow2.f32 %v745_v7 }
 0x144   : > { %2347 = vrcp.f32 %v748_v9 }
 0x145   : > { %v2338_v12 = vpop.eup %2337  ;;  %2349 = vrcp.f32 %v747_v11 }
 0x146   : > { %v2340_v13 = vpop.eup %2339  ;;  %v750_v14 = vadd.f32 1.0, %v2338_v12  ;;  %2351 = vpow2.f32 %v743_v10 }
 0x147   : > { %v749_v15 = vadd.f32 1.0, %v2340_v13 }
 0x149   : > { %v2342_v16 = vpop.eup %2341  ;;  %2353 = vrcp.f32 %v749_v15 }
 0x14a   : > { %v2344_v17 = vpop.eup %2343  ;;  %2355 = vrcp.f32 %v750_v14  ;;  %v752_v18 = vadd.f32 1.0, %v2342_v16 }
 0x14b   : > { %v751_v19 = vadd.f32 1.0, %v2344_v17 }
 0x14d   : > { %v2346_v20 = vpop.eup %2345  ;;  %2357 = vrcp.f32 %v751_v19 }
 0x14e   : > { %v2348_v21 = vpop.eup %2347  ;;  %2359 = vrcp.f32 %v752_v18  ;;  %v754_v24 = vadd.f32 1.0, %v2346_v20 }
 0x14f   : > { %v2350_v22 = vpop.eup %2349 }
 0x150   : > { %v2352_v23 = vpop.eup %2351  ;;  %2064 = vmatprep.mubr.msk.f32.mxu1 %vm765_vm1, %v2350_v22 }
 0x151   : > { %v753_v25 = vadd.f32 1.0, %v2352_v23  ;;  %2065 = vmatmul.mubr.msk.f32.vlgmr.msra.gmra.mrb[16].mxu1 %vm765_vm1, %v2348_v21 }
 0x153   : > { %v2354_v26 = vpop.eup %2353  ;;  %2361 = vrcp.f32 %v753_v25 }
 0x154   : > { %v2356_v27 = vpop.eup %2355  ;;  %2363 = vrcp.f32 %v754_v24  ;;  %2067 = vmatprep.mubr.msk.f32.mxu1 %vm765_vm1, %v2354_v26 }
 0x155   : > { %2068 = vmatmul.mubr.msk.f32.gmra.mrb[18].mxu1 %vm765_vm1, %v2356_v27 }
 0x157   : > { %v2358_v28 = vpop.eup %2357 }
 0x158   : > { %v2360_v29 = vpop.eup %2359  ;;  %2070 = vmatprep.mubr.msk.f32.mxu1 %vm765_vm1, %v2358_v28 }
 0x159   : > { %2071 = vmatmul.mubr.msk.f32.gmra.mrb[20].mxu1 %vm765_vm1, %v2360_v29 }
 0x15d   : > { %v2362_v30 = vpop.eup %2361 }
 0x15e   : > { %v2364_v31 = vpop.eup %2363  ;;  %2073 = vmatprep.mubr.msk.f32.mxu1 %vm765_vm1, %v2362_v30 }
 0x15f   : > { %2074 = vmatmul.mubr.msk.f32.gmra.mrb[22].mxu1 %vm765_vm1, %v2364_v31 }
 0x160   : > { %2108 = vmatprep.mubr.msk.f32.mxu1 %vm765_vm1, %v2759_v32 }
 0x224   : > { %v2066_v33 = vpop.f32.mrb[16].mxu1 }
 0x225   : > { %v856_v34 = vpop.f32.mrb[17].mxu1 }
 0x226   : > { %v2272_v35 = vpack.c.bf16 %v2066_v33, %v856_v34 }
 0x228   : > { %v2069_v36 = vpop.f32.mrb[18].mxu1  ;;  %2273 = vmatprep.subr.bf16.mxu0 %v2272_v35 }
 0x229   : > { %v866_v37 = vpop.f32.mrb[19].mxu1  ;;  %2275 = vmatpush3.bf16.msra.mxu0 %v2272_v35 }
 0x22a   : > { %v2276_v39 = vpack.c.bf16 %v2069_v36, %v866_v37 }
 0x22c   : > { %v2072_v41 = vpop.f32.mrb[20].mxu1  ;;  %2277 = vmatprep.subr.bf16.mxu1 %v2276_v39  ;;  %2081 = vmatmul.mubr.msk.f32.vlgmr.msra.gmra.mrb[24].mxu0 %vm765_vm1, %v896_v38 }
 0x22d   : > { %v876_v42 = vpop.f32.mrb[21].mxu1  ;;  %2279 = vmatpush3.bf16.msra.mxu1 %v2276_v39  ;;  %2083 = vmatprep.mubr.msk.f32.mxu0 %vm765_vm1, %v897_v40 }
 0x22e   : > { %v2280_v43 = vpack.c.bf16 %v2072_v41, %v876_v42 }
 0x230   : > { %2281 = vmatprep.subr.bf16.mxu0 %v2280_v43  ;;  %2109 = vmatmul.mubr.msk.f32.vlgmr.msra.gmra.mrb[24].mxu1 %vm765_vm1, %v896_v38 }
 0x231   : > { %2283 = vmatpush3.bf16.msra.mxu0 %v2280_v43  ;;  %2111 = vmatprep.mubr.msk.f32.mxu1 %vm765_vm1, %v897_v40 }
 0x232   : > { %v2075_v46 = vpop.f32.mrb[22].mxu1  ;;  %2084 = vmatmul.mubr.msk.f32.gmra.mrb[26].mxu0 %vm765_vm1, %v898_v44 }
 0x233   : > { %v886_v48 = vpop.f32.mrb[23].mxu1  ;;  %2086 = vmatprep.mubr.msk.f32.mxu0 %vm765_vm1, %v899_v45 }
 0x234   : > { %v2284_v50 = vpack.c.bf16 %v2075_v46, %v886_v48  ;;  %2112 = vmatmul.mubr.msk.f32.gmra.mrb[26].mxu1 %vm765_vm1, %v898_v44 }
 0x235   : > { %2114 = vmatprep.mubr.msk.f32.mxu1 %vm765_vm1, %v899_v45 }
 0x236   : > { %2285 = vmatprep.subr.bf16.mxu1 %v2284_v50  ;;  %2087 = vmatmul.mubr.msk.f32.gmra.mrb[28].mxu0 %vm765_vm1, %v900_v49 }
 0x237   : > { %2287 = vmatpush3.bf16.msra.mxu1 %v2284_v50  ;;  %2089 = vmatprep.mubr.msk.f32.mxu0 %vm765_vm1, %v901_v51 }
 0x238   : > { %2115 = vmatmul.mubr.msk.f32.gmra.mrb[28].mxu1 %vm765_vm1, %v900_v49 }
 0x239   : > { %2117 = vmatprep.mubr.msk.f32.mxu1 %vm765_vm1, %v901_v51 }
 0x23a   : > { %2090 = vmatmul.mubr.msk.f32.gmra.mrb[30].mxu0 %vm765_vm1, %v902_v52 }
 0x23b   : > { %2092 = vmatprep.mubr.msk.f32.mxu0 %vm765_vm1, %v903_v53 }
 0x23c   : > { %2118 = vmatmul.mubr.msk.f32.gmra.mrb[30].mxu1 %vm765_vm1, %v902_v52 }
 0x23d   : > { %2120 = vmatprep.mubr.msk.f32.mxu1 %vm765_vm1, %v903_v53 }
 0x23e   : > { %2093 = vmatmul.mubr.msk.f32.gmra.mrb[32].mxu0 %vm765_vm1, %v904_v54 }
 0x23f   : > { %2095 = vmatprep.mubr.msk.f32.mxu0 %vm765_vm1, %v905_v56 }
 0x240   : > { %2121 = vmatmul.mubr.msk.f32.gmra.mrb[32].mxu1 %vm765_vm1, %v904_v54 }
 0x241   : > { %2123 = vmatprep.mubr.msk.f32.mxu1 %vm765_vm1, %v905_v56 }
 0x242   : > { %2096 = vmatmul.mubr.msk.f32.gmra.mrb[34].mxu0 %vm765_vm1, %v906_v57 }
 0x243   : > { %2098 = vmatprep.mubr.msk.f32.mxu0 %vm765_vm1, %v907_v58 }
 0x244   : > { %2124 = vmatmul.mubr.msk.f32.gmra.mrb[34].mxu1 %vm765_vm1, %v906_v57 }
 0x245   : > { %2126 = vmatprep.mubr.msk.f32.mxu1 %vm765_vm1, %v907_v58 }
 0x246   : > { %2099 = vmatmul.mubr.msk.f32.gmra.mrb[36].mxu0 %vm765_vm1, %v908_v59 }
 0x247   : > { %2101 = vmatprep.mubr.msk.f32.mxu0 %vm765_vm1, %v909_v55 }
 0x248   : > { %2127 = vmatmul.mubr.msk.f32.gmra.mrb[36].mxu1 %vm765_vm1, %v908_v59 }
 0x249   : > { %2129 = vmatprep.mubr.msk.f32.mxu1 %vm765_vm1, %v909_v55 }
 0x24a   : > { %2102 = vmatmul.mubr.msk.f32.gmra.mrb[38].mxu0 %vm765_vm1, %v910_v60 }
 0x24b   : > { %2136 = vmatprep.mubr.msk.f32.mxu0 %vm765_vm1, %v2759_v32 }
 0x24c   : > { %2130 = vmatmul.mubr.msk.f32.gmra.mrb[38].mxu1 %vm765_vm1, %v910_v60 }
 0x24d   : > { %2164 = vmatprep.mubr.msk.f32.mxu1 %vm765_vm1, %v2759_v32 }
 0x24e   : > { %2137 = vmatmul.mubr.msk.f32.vlgmr.msra.gmra.mrb[40].mxu0 %vm765_vm1, %v896_v38 }
 0x24f   : > { %2139 = vmatprep.mubr.msk.f32.mxu0 %vm765_vm1, %v897_v40 }
 0x250   : > { %2165 = vmatmul.mubr.msk.f32.vlgmr.msra.gmra.mrb[40].mxu1 %vm765_vm1, %v896_v38 }
 0x251   : > { %2167 = vmatprep.mubr.msk.f32.mxu1 %vm765_vm1, %v897_v40 }
 0x252   : > { %2140 = vmatmul.mubr.msk.f32.gmra.mrb[42].mxu0 %vm765_vm1, %v898_v44 }
 0x253   : > { %2142 = vmatprep.mubr.msk.f32.mxu0 %vm765_vm1, %v899_v45 }
 0x254   : > { %2168 = vmatmul.mubr.msk.f32.gmra.mrb[42].mxu1 %vm765_vm1, %v898_v44 }
 0x255   : > { %2170 = vmatprep.mubr.msk.f32.mxu1 %vm765_vm1, %v899_v45 }
 0x256   : > { %2143 = vmatmul.mubr.msk.f32.gmra.mrb[44].mxu0 %vm765_vm1, %v900_v49 }
 0x257   : > { %2145 = vmatprep.mubr.msk.f32.mxu0 %vm765_vm1, %v901_v51 }
 0x258   : > { %2171 = vmatmul.mubr.msk.f32.gmra.mrb[44].mxu1 %vm765_vm1, %v900_v49 }
 0x259   : > { %2173 = vmatprep.mubr.msk.f32.mxu1 %vm765_vm1, %v901_v51 }
 0x25a   : > { %2146 = vmatmul.mubr.msk.f32.gmra.mrb[46].mxu0 %vm765_vm1, %v902_v52 }
 0x25b   : > { %2148 = vmatprep.mubr.msk.f32.mxu0 %vm765_vm1, %v903_v53 }
 0x25c   : > { %2174 = vmatmul.mubr.msk.f32.gmra.mrb[46].mxu1 %vm765_vm1, %v902_v52 }
 0x25d   : > { %2176 = vmatprep.mubr.msk.f32.mxu1 %vm765_vm1, %v903_v53 }
 0x25e   : > { %2149 = vmatmul.mubr.msk.f32.gmra.mrb[48].mxu0 %vm765_vm1, %v904_v54 }
 0x25f   : > { %2151 = vmatprep.mubr.msk.f32.mxu0 %vm765_vm1, %v905_v56 }
 0x260   : > { %2177 = vmatmul.mubr.msk.f32.gmra.mrb[48].mxu1 %vm765_vm1, %v904_v54 }
 0x261   : > { %2179 = vmatprep.mubr.msk.f32.mxu1 %vm765_vm1, %v905_v56 }
 0x262   : > { %2152 = vmatmul.mubr.msk.f32.gmra.mrb[50].mxu0 %vm765_vm1, %v906_v57 }
 0x263   : > { %2154 = vmatprep.mubr.msk.f32.mxu0 %vm765_vm1, %v907_v58 }
 0x264   : > { %2180 = vmatmul.mubr.msk.f32.gmra.mrb[50].mxu1 %vm765_vm1, %v906_v57 }
 0x265   : > { %2182 = vmatprep.mubr.msk.f32.mxu1 %vm765_vm1, %v907_v58 }
 0x266   : > { %2155 = vmatmul.mubr.msk.f32.gmra.mrb[52].mxu0 %vm765_vm1, %v908_v59 }
 0x267   : > { %2157 = vmatprep.mubr.msk.f32.mxu0 %vm765_vm1, %v909_v55 }
 0x268   : > { %2183 = vmatmul.mubr.msk.f32.gmra.mrb[52].mxu1 %vm765_vm1, %v908_v59 }
 0x269   : > { %2185 = vmatprep.mubr.msk.f32.mxu1 %vm765_vm1, %v909_v55 }
 0x26a   : > { %2158 = vmatmul.mubr.msk.f32.gmra.mrb[54].mxu0 %vm765_vm1, %v910_v60 }
 0x26c   : > { %2186 = vmatmul.mubr.msk.f32.gmra.mrb[54].mxu1 %vm765_vm1, %v910_v60 }
 0x2ff   : > { %v2082_v47 = vpop.f32.mrb[24].mxu0 }
 0x300   : > { %1105 = vst [vmem:[%s2877_s13 + $0x8] sm:$0xff] %v2082_v47  ;;  %v1025_v61 = vpop.f32.mrb[25].mxu0 }
 0x301   : > { %1104 = vst [vmem:[%s2877_s13] sm:$0xff] %v1025_v61 }
 0x303   : > { %v2110_v62 = vpop.f32.mrb[24].mxu1 }
 0x304   : > { %1737 = vst [vmem:[%s2877_s13 + $0x88] sm:$0xff] %v2110_v62  ;;  %v1186_v63 = vpop.f32.mrb[25].mxu1 }
 0x305   : > { %1736 = vst [vmem:[%s2877_s13 + $0x80] sm:$0xff] %v1186_v63  ;;  %v2085_v1 = vpop.f32.mrb[26].mxu0 }
 0x306   : > { %1107 = vst [vmem:[%s2877_s13 + $0x18] sm:$0xff] %v2085_v1  ;;  %v1035_v2 = vpop.f32.mrb[27].mxu0 }
 0x307   : > { %v2113_v3 = vpop.f32.mrb[26].mxu1  ;;  %1106 = vst [vmem:[%s2877_s13 + $0x10] sm:$0xff] %v1035_v2 }
 0x308   : > { %1739 = vst [vmem:[%s2877_s13 + $0x98] sm:$0xff] %v2113_v3  ;;  %v1196_v0 = vpop.f32.mrb[27].mxu1 }
 0x309   : > { %1738 = vst [vmem:[%s2877_s13 + $0x90] sm:$0xff] %v1196_v0  ;;  %v2088_v4 = vpop.f32.mrb[28].mxu0 }
 0x30a   : > { %1109 = vst [vmem:[%s2877_s13 + $0x28] sm:$0xff] %v2088_v4  ;;  %v1045_v5 = vpop.f32.mrb[29].mxu0 }
 0x30b   : > { %v2116_v6 = vpop.f32.mrb[28].mxu1  ;;  %1108 = vst [vmem:[%s2877_s13 + $0x20] sm:$0xff] %v1045_v5 }
 0x30c   : > { %1741 = vst [vmem:[%s2877_s13 + $0xa8] sm:$0xff] %v2116_v6  ;;  %v1206_v7 = vpop.f32.mrb[29].mxu1 }
 0x30d   : > { %1740 = vst [vmem:[%s2877_s13 + $0xa0] sm:$0xff] %v1206_v7  ;;  %v2091_v8 = vpop.f32.mrb[30].mxu0 }
 0x30e   : > { %1111 = vst [vmem:[%s2877_s13 + $0x38] sm:$0xff] %v2091_v8  ;;  %v1055_v9 = vpop.f32.mrb[31].mxu0 }
 0x30f   : > { %v2119_v10 = vpop.f32.mrb[30].mxu1  ;;  %1110 = vst [vmem:[%s2877_s13 + $0x30] sm:$0xff] %v1055_v9 }
 0x310   : > { %1743 = vst [vmem:[%s2877_s13 + $0xb8] sm:$0xff] %v2119_v10  ;;  %v1216_v11 = vpop.f32.mrb[31].mxu1 }
 0x311   : > { %1742 = vst [vmem:[%s2877_s13 + $0xb0] sm:$0xff] %v1216_v11  ;;  %v2094_v12 = vpop.f32.mrb[32].mxu0 }
 0x312   : > { %1113 = vst [vmem:[%s2877_s13 + $0x48] sm:$0xff] %v2094_v12  ;;  %v1065_v13 = vpop.f32.mrb[33].mxu0 }
 0x313   : > { %v2122_v14 = vpop.f32.mrb[32].mxu1  ;;  %1112 = vst [vmem:[%s2877_s13 + $0x40] sm:$0xff] %v1065_v13 }
 0x314   : > { %1745 = vst [vmem:[%s2877_s13 + $0xc8] sm:$0xff] %v2122_v14  ;;  %v1226_v15 = vpop.f32.mrb[33].mxu1 }
 0x315   : > { %1744 = vst [vmem:[%s2877_s13 + $0xc0] sm:$0xff] %v1226_v15  ;;  %v2097_v16 = vpop.f32.mrb[34].mxu0 }
 0x316   : > { %1115 = vst [vmem:[%s2877_s13 + $0x58] sm:$0xff] %v2097_v16  ;;  %v1075_v17 = vpop.f32.mrb[35].mxu0 }
 0x317   : > { %v2125_v18 = vpop.f32.mrb[34].mxu1  ;;  %1114 = vst [vmem:[%s2877_s13 + $0x50] sm:$0xff] %v1075_v17 }
 0x318   : > { %1747 = vst [vmem:[%s2877_s13 + $0xd8] sm:$0xff] %v2125_v18  ;;  %v1236_v19 = vpop.f32.mrb[35].mxu1 }
 0x319   : > { %1746 = vst [vmem:[%s2877_s13 + $0xd0] sm:$0xff] %v1236_v19  ;;  %v2100_v20 = vpop.f32.mrb[36].mxu0 }
 0x31a   : > { %1117 = vst [vmem:[%s2877_s13 + $0x68] sm:$0xff] %v2100_v20  ;;  %v1085_v21 = vpop.f32.mrb[37].mxu0 }
 0x31b   : > { %v2128_v22 = vpop.f32.mrb[36].mxu1  ;;  %1116 = vst [vmem:[%s2877_s13 + $0x60] sm:$0xff] %v1085_v21 }
 0x31c   : > { %1749 = vst [vmem:[%s2877_s13 + $0xe8] sm:$0xff] %v2128_v22  ;;  %v1246_v23 = vpop.f32.mrb[37].mxu1 }
 0x31d   : > { %1748 = vst [vmem:[%s2877_s13 + $0xe0] sm:$0xff] %v1246_v23  ;;  %v2103_v24 = vpop.f32.mrb[38].mxu0 }
 0x31e   : > { %1119 = vst [vmem:[%s2877_s13 + $0x78] sm:$0xff] %v2103_v24  ;;  %v1095_v25 = vpop.f32.mrb[39].mxu0 }
 0x31f   : > { %v2131_v26 = vpop.f32.mrb[38].mxu1  ;;  %1118 = vst [vmem:[%s2877_s13 + $0x70] sm:$0xff] %v1095_v25 }
 0x320   : > { %1751 = vst [vmem:[%s2877_s13 + $0xf8] sm:$0xff] %v2131_v26  ;;  %v1256_v27 = vpop.f32.mrb[39].mxu1 }
 0x321   : > { %1750 = vst [vmem:[%s2877_s13 + $0xf0] sm:$0xff] %v1256_v27  ;;  %v2138_v28 = vpop.f32.mrb[40].mxu0 }
 0x322   : > { %1769 = vst [vmem:[%s2877_s13 + $0x108] sm:$0xff] %v2138_v28  ;;  %v1348_v29 = vpop.f32.mrb[41].mxu0 }
 0x323   : > { %v2166_v30 = vpop.f32.mrb[40].mxu1  ;;  %1768 = vst [vmem:[%s2877_s13 + $0x100] sm:$0xff] %v1348_v29 }
 0x324   : > { %1801 = vst [vmem:[%s2877_s13 + $0x188] sm:$0xff] %v2166_v30  ;;  %v1510_v31 = vpop.f32.mrb[41].mxu1 }
 0x325   : > { %1800 = vst [vmem:[%s2877_s13 + $0x180] sm:$0xff] %v1510_v31  ;;  %v2141_v32 = vpop.f32.mrb[42].mxu0 }
 0x326   : > { %1771 = vst [vmem:[%s2877_s13 + $0x118] sm:$0xff] %v2141_v32  ;;  %v1358_v33 = vpop.f32.mrb[43].mxu0 }
 0x327   : > { %v2169_v34 = vpop.f32.mrb[42].mxu1  ;;  %1770 = vst [vmem:[%s2877_s13 + $0x110] sm:$0xff] %v1358_v33 }
 0x328   : > { %1803 = vst [vmem:[%s2877_s13 + $0x198] sm:$0xff] %v2169_v34  ;;  %v1520_v35 = vpop.f32.mrb[43].mxu1 }
 0x329   : > { %1802 = vst [vmem:[%s2877_s13 + $0x190] sm:$0xff] %v1520_v35  ;;  %v2144_v36 = vpop.f32.mrb[44].mxu0 }
 0x32a   : > { %1773 = vst [vmem:[%s2877_s13 + $0x128] sm:$0xff] %v2144_v36  ;;  %v1368_v37 = vpop.f32.mrb[45].mxu0 }
 0x32b   : > { %v2172_v38 = vpop.f32.mrb[44].mxu1  ;;  %1772 = vst [vmem:[%s2877_s13 + $0x120] sm:$0xff] %v1368_v37 }
 0x32c   : > { %1805 = vst [vmem:[%s2877_s13 + $0x1a8] sm:$0xff] %v2172_v38  ;;  %v1530_v39 = vpop.f32.mrb[45].mxu1 }
 0x32d   : > { %1804 = vst [vmem:[%s2877_s13 + $0x1a0] sm:$0xff] %v1530_v39  ;;  %v2147_v40 = vpop.f32.mrb[46].mxu0 }
 0x32e   : > { %1775 = vst [vmem:[%s2877_s13 + $0x138] sm:$0xff] %v2147_v40  ;;  %v1378_v41 = vpop.f32.mrb[47].mxu0 }
 0x32f   : > { %v2175_v42 = vpop.f32.mrb[46].mxu1  ;;  %1774 = vst [vmem:[%s2877_s13 + $0x130] sm:$0xff] %v1378_v41 }
 0x330   : > { %1807 = vst [vmem:[%s2877_s13 + $0x1b8] sm:$0xff] %v2175_v42  ;;  %v1540_v43 = vpop.f32.mrb[47].mxu1 }
 0x331   : > { %1806 = vst [vmem:[%s2877_s13 + $0x1b0] sm:$0xff] %v1540_v43  ;;  %v2150_v44 = vpop.f32.mrb[48].mxu0 }
 0x332   : > { %1777 = vst [vmem:[%s2877_s13 + $0x148] sm:$0xff] %v2150_v44  ;;  %v1388_v45 = vpop.f32.mrb[49].mxu0 }
 0x333   : > { %v2178_v46 = vpop.f32.mrb[48].mxu1  ;;  %1776 = vst [vmem:[%s2877_s13 + $0x140] sm:$0xff] %v1388_v45 }
 0x334   : > { %1809 = vst [vmem:[%s2877_s13 + $0x1c8] sm:$0xff] %v2178_v46  ;;  %v1550_v48 = vpop.f32.mrb[49].mxu1 }
 0x335   : > { %1808 = vst [vmem:[%s2877_s13 + $0x1c0] sm:$0xff] %v1550_v48  ;;  %v2153_v49 = vpop.f32.mrb[50].mxu0 }
 0x336   : > { %1779 = vst [vmem:[%s2877_s13 + $0x158] sm:$0xff] %v2153_v49  ;;  %v1398_v50 = vpop.f32.mrb[51].mxu0 }
 0x337   : > { %v2181_v51 = vpop.f32.mrb[50].mxu1  ;;  %1778 = vst [vmem:[%s2877_s13 + $0x150] sm:$0xff] %v1398_v50 }
 0x338   : > { %1811 = vst [vmem:[%s2877_s13 + $0x1d8] sm:$0xff] %v2181_v51  ;;  %v1560_v52 = vpop.f32.mrb[51].mxu1 }
 0x339   : > { %1810 = vst [vmem:[%s2877_s13 + $0x1d0] sm:$0xff] %v1560_v52  ;;  %v2156_v53 = vpop.f32.mrb[52].mxu0 }
 0x33a   : > { %1781 = vst [vmem:[%s2877_s13 + $0x168] sm:$0xff] %v2156_v53  ;;  %v1408_v54 = vpop.f32.mrb[53].mxu0 }
 0x33b   : > { %v2184_v56 = vpop.f32.mrb[52].mxu1  ;;  %1780 = vst [vmem:[%s2877_s13 + $0x160] sm:$0xff] %v1408_v54 }
 0x33c   : > { %1813 = vst [vmem:[%s2877_s13 + $0x1e8] sm:$0xff] %v2184_v56  ;;  %v1570_v57 = vpop.f32.mrb[53].mxu1 }
 0x33d   : > { %1812 = vst [vmem:[%s2877_s13 + $0x1e0] sm:$0xff] %v1570_v57  ;;  %v2159_v58 = vpop.f32.mrb[54].mxu0 }
 0x33e   : > { %1783 = vst [vmem:[%s2877_s13 + $0x178] sm:$0xff] %v2159_v58  ;;  %v1418_v59 = vpop.f32.mrb[55].mxu0 }
 0x33f   : > { %v2187_v55 = vpop.f32.mrb[54].mxu1  ;;  %1782 = vst [vmem:[%s2877_s13 + $0x170] sm:$0xff] %v1418_v59 }
 0x340   : > { %1815 = vst [vmem:[%s2877_s13 + $0x1f8] sm:$0xff] %v2187_v55  ;;  %v1580_v60 = vpop.f32.mrb[55].mxu1 }
 0x341   : > { %1814 = vst [vmem:[%s2877_s13 + $0x1f0] sm:$0xff] %v1580_v60 }
 0x342   : > { %2378 = shalt.err (!%p2375_p3)
}
 0x343   : > { %s2379_s11 = scalar_lea.hbm %s2945_s6, 8192  ;;  %s2383_s15 = scalar_lea.hbm %s3000_s5, 16384 }
 0x344   : > { %p2380_p4 = scmp.ne.s32.totalorder %s2945_s6, %s2379_s11  ;;  %p2384_p9 = scmp.lt.u32.totalorder %s2945_s6, %s3000_s5 }
 0x345   : > { %p2385_p10 = scmp.lt.u32.totalorder %s2383_s15, %s2379_s11  ;;  %p2387_p12 = scmp.lt.u32.totalorder %s2379_s11, %s2945_s6 }
 0x346   : > { %p2381_p7 = pnand %p2380_p4, %p2501_p5 }
 0x347   : > { %p2386_p11 = por %p2385_p10, %p2384_p9 }
 0x348   : > { %p2382_p8 = pneg %p2381_p7 }
 0x349   : > { %p2388_p13 = por %p2387_p12, %p2386_p11 }
 0x34b   : > { %p2389_p0 = pnand %p2388_p13, %p2382_p8 }
 0x34d   : > { %2392 = shalt.err (!%p2389_p0)
}
 0x34e   : > { %s2431_s13 = smov 128   ;;  %s2432_s23 = smov 8  }
 0x34f   : > { %2289 = dma.vmem_to_hbm [thread:$0]  (%p2501_p5), %s2947_s25, 8192, %s2945_s6, %s2954_s22, %s2431_s13, %s2431_s13, %s2432_s23  }
 0x350 PF: > { %p2295_p1 = scmp.ge.s32.totalorder %s2427_s21, 2  ;;  %s1635_s26 = sand.u32 1, %s2415_s18  }
 0x351   : > { %s1636_s30 = scalar_lea.sflag [#allocation3], %s1635_s26 }
 0x352   : > { %p2292_p2 = pnand %p2295_p1, %p2505_p6 }
 0x354   : > { %2410 = dma.done.wait (!%p2292_p2), %s1636_s30, 8192  }
 0x355   : > { %2412 = vsyncadd (!%p2292_p2), %s1636_s30, 4294959104  ;;  %p15_p3 = scmp.ge.s32.totalorder %s2488_s24, 4   ;;  %s3003_s18 = smov %s2419_s19 }
 0x356   : > { %s3004_s19 = smov %s2423_s20  ;;  %s3005_s20 = smov %s2499_s27 }
 0x357   : > { %s3006_s21 = smov %s2488_s24  ;;  %17 = sbr.rel (!%p15_p3) target bundleno = 3 (0x3), region = 78 }
 0x35e   :  { %1641 = vsyncpa [#allocation3], 1 }
 0x35f   :  { %1643 = vsyncpa [#allocation3 + $0x1], 1 }

</bundles_post_ra>
